<compile_context>
chip_gen: v7x
topology: tpu7x:2x2x1
jax: 0.10.0
libtpu: 0.0.40
codegen_flags: <defaults>
</compile_context>

<pallas_src>
import jax
import jax.numpy as jnp
from jax.experimental import pallas as pl
from jax.experimental.pallas import tpu as pltpu


def linear_hardswish_kernel(x_ref, w_ref, o_ref):
    # x_ref: (1, K)        in SMEM  -- input row, read as scalars
    # w_ref: (K_pad, N)    in VMEM  -- weight pre-transposed to (in, out);
    #                                  row K holds the bias, rows > K are zero pad
    # o_ref: (1, N)        in VMEM
    k_in = x_ref.shape[1]
    acc = w_ref[k_in:k_in + 1, :]                 # start from bias row, (1, N)
    for k in range(k_in):                         # fully unrolled, 16 steps
        acc = acc + x_ref[0, k] * w_ref[k:k + 1, :]
    # hardswish: acc * clip(acc + 3, 0, 6) / 6  (min(6, .) subsumed by clip)
    gate = jnp.clip(acc + 3.0, 0.0, 6.0)
    o_ref[...] = (acc * gate * (1.0 / 6.0)).astype(o_ref.dtype)


def prepare_params(weight_nk, bias_n):
    """One-time prep: PyTorch (N, K) weight + (N,) bias -> augmented (K_pad, N).

    Row K of the result is the bias; extra rows (up to a multiple of 8
    sublanes) are zero and never read by the kernel.
    """
    n_out, k_in = weight_nk.shape
    w_aug = jnp.concatenate([weight_nk.T, bias_n.reshape(1, n_out)], axis=0)
    pad = (-(k_in + 1)) % 8
    if pad:
        w_aug = jnp.concatenate(
            [w_aug, jnp.zeros((pad, n_out), w_aug.dtype)], axis=0)
    return w_aug


@jax.jit
def linear_hardswish(x, w_aug):
    """x: (1, K); w_aug: (K_pad, N) with bias folded in at row K."""
    b, k_in = x.shape
    n_out = w_aug.shape[1]
    cost = pl.CostEstimate(
        flops=2 * k_in * n_out + 4 * n_out,
        transcendentals=0,
        bytes_accessed=(w_aug.size + x.size + b * n_out) * 4,
    )
    return pl.pallas_call(
        linear_hardswish_kernel,
        out_shape=jax.ShapeDtypeStruct((b, n_out), x.dtype),
        in_specs=[
            pl.BlockSpec(memory_space=pltpu.MemorySpace.SMEM),   # x scalars
            pl.BlockSpec(memory_space=pltpu.MemorySpace.VMEM),   # weight+bias
        ],
        out_specs=pl.BlockSpec(memory_space=pltpu.MemorySpace.VMEM),
        cost_estimate=cost,
    )(x, w_aug)


if __name__ == "__main__":
    key = jax.random.PRNGKey(0)
    kx, kw, kb = jax.random.split(key, 3)

    # Deterministic "parameters" (Linear(16, 32)), PyTorch layout (out, in)
    in_features, out_features = 16, 32
    bound = 1.0 / (in_features ** 0.5)
    weight = jax.random.uniform(
        kw, (out_features, in_features), jnp.float32, -bound, bound)
    bias = jax.random.uniform(kb, (out_features,), jnp.float32, -bound, bound)

    # One-time parameter prep (out of the hot path)
    w_aug = jax.block_until_ready(prepare_params(weight, bias))

    # Input matching the module: x1 = torch.randn(1, 16)
    x1 = jax.random.normal(kx, (1, in_features), jnp.float32)

    out = linear_hardswish(x1, w_aug)
    out = jax.block_until_ready(out)

    # Reference check in plain JAX (mirrors the PyTorch forward)
    w1 = x1 @ weight.T + bias
    ref = w1 * jnp.clip(jnp.minimum(6.0, w1 + 3.0), 0.0, 6.0) / 6.0
    assert out.shape == (1, out_features)
    assert jnp.allclose(out, ref, atol=1e-5, rtol=1e-5)

    print("KERNEL_OK")
</pallas_src>

<mosaic_0001>
module attributes {stable_mosaic.version = 11 : i64} {
  func.func @linear_hardswish_kernel(%arg0: memref<1x16xf32, #tpu.memory_space<smem>>, %arg1: memref<24x32xf32, #tpu.memory_space<vmem>>, %arg2: memref<1x32xf32, #tpu.memory_space<vmem>>) attributes {dimension_semantics = [], scalar_prefetch = 0 : i64, scratch_operands = 0 : i64, tpu.core_type = #tpu.core_type<tc>} {
    %c16 = arith.constant 16 : index
    %c0 = arith.constant 0 : index
    %0 = vector.load %arg1[%c16, %c0] : memref<24x32xf32, #tpu.memory_space<vmem>>, vector<1x32xf32>
    %c0_0 = arith.constant 0 : index
    %c0_1 = arith.constant 0 : index
    %1 = memref.load %arg0[%c0_0, %c0_1] : memref<1x16xf32, #tpu.memory_space<smem>>
    %c0_2 = arith.constant 0 : index
    %c0_3 = arith.constant 0 : index
    %2 = vector.load %arg1[%c0_2, %c0_3] : memref<24x32xf32, #tpu.memory_space<vmem>>, vector<1x32xf32>
    %3 = vector.broadcast %1 : f32 to vector<1x32xf32>
    %4 = arith.mulf %3, %2 : vector<1x32xf32>
    %5 = arith.addf %0, %4 : vector<1x32xf32>
    %c0_4 = arith.constant 0 : index
    %c1 = arith.constant 1 : index
    %6 = memref.load %arg0[%c0_4, %c1] : memref<1x16xf32, #tpu.memory_space<smem>>
    %c1_5 = arith.constant 1 : index
    %c0_6 = arith.constant 0 : index
    %7 = vector.load %arg1[%c1_5, %c0_6] : memref<24x32xf32, #tpu.memory_space<vmem>>, vector<1x32xf32>
    %8 = vector.broadcast %6 : f32 to vector<1x32xf32>
    %9 = arith.mulf %8, %7 : vector<1x32xf32>
    %10 = arith.addf %5, %9 : vector<1x32xf32>
    %c0_7 = arith.constant 0 : index
    %c2 = arith.constant 2 : index
    %11 = memref.load %arg0[%c0_7, %c2] : memref<1x16xf32, #tpu.memory_space<smem>>
    %c2_8 = arith.constant 2 : index
    %c0_9 = arith.constant 0 : index
    %12 = vector.load %arg1[%c2_8, %c0_9] : memref<24x32xf32, #tpu.memory_space<vmem>>, vector<1x32xf32>
    %13 = vector.broadcast %11 : f32 to vector<1x32xf32>
    %14 = arith.mulf %13, %12 : vector<1x32xf32>
    %15 = arith.addf %10, %14 : vector<1x32xf32>
    %c0_10 = arith.constant 0 : index
    %c3 = arith.constant 3 : index
    %16 = memref.load %arg0[%c0_10, %c3] : memref<1x16xf32, #tpu.memory_space<smem>>
    %c3_11 = arith.constant 3 : index
    %c0_12 = arith.constant 0 : index
    %17 = vector.load %arg1[%c3_11, %c0_12] : memref<24x32xf32, #tpu.memory_space<vmem>>, vector<1x32xf32>
    %18 = vector.broadcast %16 : f32 to vector<1x32xf32>
    %19 = arith.mulf %18, %17 : vector<1x32xf32>
    %20 = arith.addf %15, %19 : vector<1x32xf32>
    %c0_13 = arith.constant 0 : index
    %c4 = arith.constant 4 : index
    %21 = memref.load %arg0[%c0_13, %c4] : memref<1x16xf32, #tpu.memory_space<smem>>
    %c4_14 = arith.constant 4 : index
    %c0_15 = arith.constant 0 : index
    %22 = vector.load %arg1[%c4_14, %c0_15] : memref<24x32xf32, #tpu.memory_space<vmem>>, vector<1x32xf32>
    %23 = vector.broadcast %21 : f32 to vector<1x32xf32>
    %24 = arith.mulf %23, %22 : vector<1x32xf32>
    %25 = arith.addf %20, %24 : vector<1x32xf32>
    %c0_16 = arith.constant 0 : index
    %c5 = arith.constant 5 : index
    %26 = memref.load %arg0[%c0_16, %c5] : memref<1x16xf32, #tpu.memory_space<smem>>
    %c5_17 = arith.constant 5 : index
    %c0_18 = arith.constant 0 : index
    %27 = vector.load %arg1[%c5_17, %c0_18] : memref<24x32xf32, #tpu.memory_space<vmem>>, vector<1x32xf32>
    %28 = vector.broadcast %26 : f32 to vector<1x32xf32>
    %29 = arith.mulf %28, %27 : vector<1x32xf32>
    %30 = arith.addf %25, %29 : vector<1x32xf32>
    %c0_19 = arith.constant 0 : index
    %c6 = arith.constant 6 : index
    %31 = memref.load %arg0[%c0_19, %c6] : memref<1x16xf32, #tpu.memory_space<smem>>
    %c6_20 = arith.constant 6 : index
    %c0_21 = arith.constant 0 : index
    %32 = vector.load %arg1[%c6_20, %c0_21] : memref<24x32xf32, #tpu.memory_space<vmem>>, vector<1x32xf32>
    %33 = vector.broadcast %31 : f32 to vector<1x32xf32>
    %34 = arith.mulf %33, %32 : vector<1x32xf32>
    %35 = arith.addf %30, %34 : vector<1x32xf32>
    %c0_22 = arith.constant 0 : index
    %c7 = arith.constant 7 : index
    %36 = memref.load %arg0[%c0_22, %c7] : memref<1x16xf32, #tpu.memory_space<smem>>
    %c7_23 = arith.constant 7 : index
    %c0_24 = arith.constant 0 : index
    %37 = vector.load %arg1[%c7_23, %c0_24] : memref<24x32xf32, #tpu.memory_space<vmem>>, vector<1x32xf32>
    %38 = vector.broadcast %36 : f32 to vector<1x32xf32>
    %39 = arith.mulf %38, %37 : vector<1x32xf32>
    %40 = arith.addf %35, %39 : vector<1x32xf32>
    %c0_25 = arith.constant 0 : index
    %c8 = arith.constant 8 : index
    %41 = memref.load %arg0[%c0_25, %c8] : memref<1x16xf32, #tpu.memory_space<smem>>
    %c8_26 = arith.constant 8 : index
    %c0_27 = arith.constant 0 : index
    %42 = vector.load %arg1[%c8_26, %c0_27] : memref<24x32xf32, #tpu.memory_space<vmem>>, vector<1x32xf32>
    %43 = vector.broadcast %41 : f32 to vector<1x32xf32>
    %44 = arith.mulf %43, %42 : vector<1x32xf32>
    %45 = arith.addf %40, %44 : vector<1x32xf32>
    %c0_28 = arith.constant 0 : index
    %c9 = arith.constant 9 : index
    %46 = memref.load %arg0[%c0_28, %c9] : memref<1x16xf32, #tpu.memory_space<smem>>
    %c9_29 = arith.constant 9 : index
    %c0_30 = arith.constant 0 : index
    %47 = vector.load %arg1[%c9_29, %c0_30] : memref<24x32xf32, #tpu.memory_space<vmem>>, vector<1x32xf32>
    %48 = vector.broadcast %46 : f32 to vector<1x32xf32>
    %49 = arith.mulf %48, %47 : vector<1x32xf32>
    %50 = arith.addf %45, %49 : vector<1x32xf32>
    %c0_31 = arith.constant 0 : index
    %c10 = arith.constant 10 : index
    %51 = memref.load %arg0[%c0_31, %c10] : memref<1x16xf32, #tpu.memory_space<smem>>
    %c10_32 = arith.constant 10 : index
    %c0_33 = arith.constant 0 : index
    %52 = vector.load %arg1[%c10_32, %c0_33] : memref<24x32xf32, #tpu.memory_space<vmem>>, vector<1x32xf32>
    %53 = vector.broadcast %51 : f32 to vector<1x32xf32>
    %54 = arith.mulf %53, %52 : vector<1x32xf32>
    %55 = arith.addf %50, %54 : vector<1x32xf32>
    %c0_34 = arith.constant 0 : index
    %c11 = arith.constant 11 : index
    %56 = memref.load %arg0[%c0_34, %c11] : memref<1x16xf32, #tpu.memory_space<smem>>
    %c11_35 = arith.constant 11 : index
    %c0_36 = arith.constant 0 : index
    %57 = vector.load %arg1[%c11_35, %c0_36] : memref<24x32xf32, #tpu.memory_space<vmem>>, vector<1x32xf32>
    %58 = vector.broadcast %56 : f32 to vector<1x32xf32>
    %59 = arith.mulf %58, %57 : vector<1x32xf32>
    %60 = arith.addf %55, %59 : vector<1x32xf32>
    %c0_37 = arith.constant 0 : index
    %c12 = arith.constant 12 : index
    %61 = memref.load %arg0[%c0_37, %c12] : memref<1x16xf32, #tpu.memory_space<smem>>
    %c12_38 = arith.constant 12 : index
    %c0_39 = arith.constant 0 : index
    %62 = vector.load %arg1[%c12_38, %c0_39] : memref<24x32xf32, #tpu.memory_space<vmem>>, vector<1x32xf32>
    %63 = vector.broadcast %61 : f32 to vector<1x32xf32>
    %64 = arith.mulf %63, %62 : vector<1x32xf32>
    %65 = arith.addf %60, %64 : vector<1x32xf32>
    %c0_40 = arith.constant 0 : index
    %c13 = arith.constant 13 : index
    %66 = memref.load %arg0[%c0_40, %c13] : memref<1x16xf32, #tpu.memory_space<smem>>
    %c13_41 = arith.constant 13 : index
    %c0_42 = arith.constant 0 : index
    %67 = vector.load %arg1[%c13_41, %c0_42] : memref<24x32xf32, #tpu.memory_space<vmem>>, vector<1x32xf32>
    %68 = vector.broadcast %66 : f32 to vector<1x32xf32>
    %69 = arith.mulf %68, %67 : vector<1x32xf32>
    %70 = arith.addf %65, %69 : vector<1x32xf32>
    %c0_43 = arith.constant 0 : index
    %c14 = arith.constant 14 : index
    %71 = memref.load %arg0[%c0_43, %c14] : memref<1x16xf32, #tpu.memory_space<smem>>
    %c14_44 = arith.constant 14 : index
    %c0_45 = arith.constant 0 : index
    %72 = vector.load %arg1[%c14_44, %c0_45] : memref<24x32xf32, #tpu.memory_space<vmem>>, vector<1x32xf32>
    %73 = vector.broadcast %71 : f32 to vector<1x32xf32>
    %74 = arith.mulf %73, %72 : vector<1x32xf32>
    %75 = arith.addf %70, %74 : vector<1x32xf32>
    %c0_46 = arith.constant 0 : index
    %c15 = arith.constant 15 : index
    %76 = memref.load %arg0[%c0_46, %c15] : memref<1x16xf32, #tpu.memory_space<smem>>
    %c15_47 = arith.constant 15 : index
    %c0_48 = arith.constant 0 : index
    %77 = vector.load %arg1[%c15_47, %c0_48] : memref<24x32xf32, #tpu.memory_space<vmem>>, vector<1x32xf32>
    %78 = vector.broadcast %76 : f32 to vector<1x32xf32>
    %79 = arith.mulf %78, %77 : vector<1x32xf32>
    %80 = arith.addf %75, %79 : vector<1x32xf32>
    %cst = arith.constant 3.000000e+00 : f32
    %81 = vector.broadcast %cst : f32 to vector<1x32xf32>
    %82 = arith.addf %80, %81 : vector<1x32xf32>
    %cst_49 = arith.constant 0.000000e+00 : f32
    %cst_50 = arith.constant 6.000000e+00 : f32
    %83 = vector.broadcast %cst_49 : f32 to vector<1x32xf32>
    %84 = arith.maximumf %83, %82 : vector<1x32xf32>
    %85 = vector.broadcast %cst_50 : f32 to vector<1x32xf32>
    %86 = arith.minimumf %85, %84 : vector<1x32xf32>
    %87 = arith.mulf %80, %86 : vector<1x32xf32>
    %cst_51 = arith.constant 0.166666672 : f32
    %88 = vector.broadcast %cst_51 : f32 to vector<1x32xf32>
    %89 = arith.mulf %87, %88 : vector<1x32xf32>
    %c0_52 = arith.constant 0 : index
    %c0_53 = arith.constant 0 : index
    %90 = vector.load %arg2[%c0_52, %c0_53] : memref<1x32xf32, #tpu.memory_space<vmem>>, vector<1x32xf32>
    tpu.vector_store %arg2[%c0_52, %c0_53], %89 {strides = array<i32>} : memref<1x32xf32, #tpu.memory_space<vmem>>, vector<1x32xf32>,
    return
  }
}

</mosaic_0001>

<bundles_post_ra>
// kernel: linear_hardswish.1
= control target key start
LH: loop header
LB: loop body
LE: loop exit
PB: predicated region body
PF: predicated region fallthrough
CT: control target
= control target key end

     0   :  { %7 = vsyncpa [#allocation5], 0  ;;  %s277_s0 = inlined_call_operand.hbm [shape: f32[1,16], index: 0, kind: input, shape index: {}]   ;;  %s278_s1 = inlined_call_operand.hbm [shape: f32[24,32], index: 1, kind: input, shape index: {}]   ;;  %s279_s2 = inlined_call_operand.hbm [shape: f32[1,32], index: 2, kind: output, shape index: {}]  }
   0x1   :  { %8 = vsyncpa [#allocation3], 0 }
   0x2   :  { %9 = vsyncpa [#allocation4], 0  ;;  %s161_s11 = scalar_lea.hbm %s277_s0, 16 }
   0x3   :  { %p162_p0 = scmp.ne.s32.totalorder %s277_s0, %s161_s11  ;;  %p165_p1 = scmp.lt.u32.totalorder %s161_s11, %s277_s0 }
   0x5   :  { %p167_p2 = pnand %p165_p1, %p162_p0 }
   0x7   :  { %170 = shalt.err (!%p167_p2)
}
   0x8   :  { %s221_s16 = smov [#allocation2]   ;;  %s222_s19 = smov [#allocation6]  }
   0x9   :  { %17 = dma.hbm_to_smem %s277_s0, 16, %s221_s16, [#allocation5]  }
   0xa   :  { %s23_s20 = sshll.u32 %s222_s19, 4  ;;  %s171_s23 = scalar_lea.hbm %s278_s1, 384  ;;  %s24_s20 = int_to_ptr.vmem [resolvable:$true] %s23_s20 }
   0xb   :  { %p172_p3 = scmp.ne.s32.totalorder %s278_s1, %s171_s23  ;;  %p175_p4 = scmp.lt.u32.totalorder %s171_s23, %s278_s1 }
   0xd   :  { %p177_p5 = pnand %p175_p4, %p172_p3 }
   0xf   :  { %180 = shalt.err (!%p177_p5)
}
  0x10   :  { %s181_s28 = scalar_lea.vmem %s24_s20, 384  ;;  %p186_p7 = scmp.lt.s32.totalorder %s24_s20, %s24_s20 }
  0x11   :  { %p182_p6 = scmp.ne.s32.totalorder %s24_s20, %s181_s28  ;;  %p187_p8 = scmp.lt.s32.totalorder %s181_s28, %s181_s28 }
  0x13   :  { %p188_p9 = por %p187_p8, %p186_p7 }
  0x15   :  { %p189_p10 = pnand %p188_p9, %p182_p6 }
  0x17   :  { %192 = shalt.err (!%p189_p10)
}
  0x18   :  { %s223_s0 = smov 128   ;;  %s224_s29 = smov 8  }
  0x19   :  { %29 = dma.hbm_to_vmem [thread:$0]  %s278_s1, 384, %s24_s20, [#allocation3], %s223_s0, %s223_s0, %s224_s29  }
  0x1a   :  { %215 = dma.done.wait [#allocation5], 16  }
  0x1b   :  { %216 = vsyncadd [#allocation5], 4294967280 }
  0x1c   :  { %217 = dma.done.wait [#allocation3], 384  }
  0x1d   :  { %218 = vsyncadd [#allocation3], 4294966912 }
  0x1e   :  { %36 = sfence }
  0x1f   :  { %s38_s4 = sld [smem:[#allocation2]]  ;;  %s141_s5 = sld [smem:[#allocation2 + $0x1]]  ;;  %v39_v0 = vld [vmem:[#allocation6] sm:$0x1]  ;;  %v44_v1 = vld [vmem:[#allocation6 + $0x1] sm:$0x1] }
  0x20   :  { %s142_s6 = sld [smem:[#allocation2 + $0x2]]  ;;  %s143_s7 = sld [smem:[#allocation2 + $0x3]]  ;;  %v37_v2 = vld [vmem:[#allocation6 + $0x10] sm:$0x1]  ;;  %v49_v4 = vld [vmem:[#allocation6 + $0x2] sm:$0x1] }
  0x21   :  { %s144_s8 = sld [smem:[#allocation2 + $0x4]]  ;;  %s145_s9 = sld [smem:[#allocation2 + $0x5]]  ;;  %v54_v9 = vld [vmem:[#allocation6 + $0x3] sm:$0x1]  ;;  %v59_v13 = vld [vmem:[#allocation6 + $0x4] sm:$0x1] }
  0x22   :  { %s146_s10 = sld [smem:[#allocation2 + $0x6]]  ;;  %s147_s1 = sld [smem:[#allocation2 + $0x7]]  ;;  %v64_v17 = vld [vmem:[#allocation6 + $0x5] sm:$0x1]  ;;  %v69_v21 = vld [vmem:[#allocation6 + $0x6] sm:$0x1] }
  0x23   :  { %s148_s11 = sld [smem:[#allocation2 + $0x8]]  ;;  %s149_s12 = sld [smem:[#allocation2 + $0x9]]  ;;  %v74_v25 = vld [vmem:[#allocation6 + $0x7] sm:$0x1]  ;;  %v79_v29 = vld [vmem:[#allocation6 + $0x8] sm:$0x1] }
  0x24   :  { %s150_s13 = sld [smem:[#allocation2 + $0xa]]  ;;  %s151_s14 = sld [smem:[#allocation2 + $0xb]]  ;;  %v84_v33 = vld [vmem:[#allocation6 + $0x9] sm:$0x1]  ;;  %v89_v37 = vld [vmem:[#allocation6 + $0xa] sm:$0x1] }
  0x25   :  { %v40_v3 = vstv %s38_s4  ;;  %v45_v6 = vstv %s141_s5  ;;  %s152_s15 = sld [smem:[#allocation2 + $0xc]]  ;;  %s153_s16 = sld [smem:[#allocation2 + $0xd]]  ;;  %v94_v41 = vld [vmem:[#allocation6 + $0xb] sm:$0x1]  ;;  %v99_v45 = vld [vmem:[#allocation6 + $0xc] sm:$0x1] }
  0x26   :  { %v41_v5 = vmul.f32 %v40_v3, %v39_v0  ;;  %v50_v7 = vstv %s142_s6  ;;  %v46_v8 = vmul.f32 %v45_v6, %v44_v1  ;;  %v55_v10 = vstv %s143_s7  ;;  %s154_s17 = sld [smem:[#allocation2 + $0xe]]  ;;  %s155_s18 = sld [smem:[#allocation2 + $0xf]]  ;;  %v104_v49 = vld [vmem:[#allocation6 + $0xd] sm:$0x1]  ;;  %v109_v53 = vld [vmem:[#allocation6 + $0xe] sm:$0x1] }
  0x27   :  { %v51_v12 = vmul.f32 %v50_v7, %v49_v4  ;;  %v60_v14 = vstv %s144_s8  ;;  %v56_v16 = vmul.f32 %v55_v10, %v54_v9  ;;  %v65_v18 = vstv %s145_s9  ;;  %v114_v57 = vld [vmem:[#allocation6 + $0xf] sm:$0x1]  ;;  %s225_s19 = smov [#allocation7]  }
  0x28   :  { %v42_v11 = vadd.f32 %v41_v5, %v37_v2  ;;  %v61_v20 = vmul.f32 %v60_v14, %v59_v13  ;;  %v70_v22 = vstv %s146_s10  ;;  %v66_v24 = vmul.f32 %v65_v18, %v64_v17  ;;  %s131_s20 = sshll.u32 %s225_s19, 4  ;;  %s132_s20 = int_to_ptr.vmem [resolvable:$true] %s131_s20 }
  0x29   :  { %v75_v26 = vstv %s147_s1  ;;  %v71_v28 = vmul.f32 %v70_v22, %v69_v21  ;;  %v80_v30 = vstv %s148_s11  ;;  %v85_v34 = vstv %s149_s12  ;;  %s193_s21 = scalar_lea.vmem %s132_s20, 16  ;;  %s197_s22 = scalar_lea.vmem %s132_s20, 32 }
  0x2a   :  { %v47_v15 = vadd.f32 %v46_v8, %v42_v11  ;;  %v76_v32 = vmul.f32 %v75_v26, %v74_v25  ;;  %v81_v36 = vmul.f32 %v80_v30, %v79_v29  ;;  %v90_v38 = vstv %s150_s13  ;;  %p194_p11 = scmp.ne.s32.totalorder %s132_s20, %s193_s21  ;;  %p198_p12 = scmp.lt.s32.totalorder %s132_s20, %s132_s20 }
  0x2b   :  { %v86_v40 = vmul.f32 %v85_v34, %v84_v33  ;;  %v95_v42 = vstv %s151_s14  ;;  %v91_v44 = vmul.f32 %v90_v38, %v89_v37  ;;  %v100_v46 = vstv %s152_s15  ;;  %p199_p13 = scmp.lt.s32.totalorder %s197_s22, %s193_s21 }
  0x2c   :  { %v52_v19 = vadd.f32 %v51_v12, %v47_v15  ;;  %v96_v48 = vmul.f32 %v95_v42, %v94_v41  ;;  %v105_v50 = vstv %s153_s16  ;;  %v101_v52 = vmul.f32 %v100_v46, %v99_v45 }
  0x2d   :  { %v110_v54 = vstv %s154_s17  ;;  %v106_v56 = vmul.f32 %v105_v50, %v104_v49  ;;  %v115_v58 = vstv %s155_s18  ;;  %vm123_vm0 = vcmask 253952   ;;  %p200_p0 = por %p199_p13, %p198_p12 }
  0x2e   :  { %v57_v23 = vadd.f32 %v56_v16, %v52_v19  ;;  %v111_v60 = vmul.f32 %v110_v54, %v109_v53  ;;  %v116_v62 = vmul.f32 %v115_v58, %v114_v57 }
  0x2f   :  { %p201_p1 = pnand %p200_p0, %p194_p11 }
  0x30   :  { %v62_v27 = vadd.f32 %v61_v20, %v57_v23 }
  0x32   :  { %v67_v31 = vadd.f32 %v66_v24, %v62_v27 }
  0x34   :  { %v72_v35 = vadd.f32 %v71_v28, %v67_v31 }
  0x36   :  { %v77_v39 = vadd.f32 %v76_v32, %v72_v35 }
  0x38   :  { %v82_v43 = vadd.f32 %v81_v36, %v77_v39 }
  0x3a   :  { %v87_v47 = vadd.f32 %v86_v40, %v82_v43 }
  0x3c   :  { %v92_v51 = vadd.f32 %v91_v44, %v87_v47 }
  0x3e   :  { %v97_v55 = vadd.f32 %v96_v48, %v92_v51 }
  0x40   :  { %v102_v59 = vadd.f32 %v101_v52, %v97_v55 }
  0x42   :  { %v107_v61 = vadd.f32 %v106_v56, %v102_v59 }
  0x44   :  { %v112_v63 = vadd.f32 %v111_v60, %v107_v61 }
  0x46   :  { %v117_v0 = vadd.f32 %v116_v62, %v112_v63 }
  0x48   :  { %v118_v1 = vadd.f32 3.0, %v117_v0 }
  0x4a   :  { %v119_v2 = vmax.f32 %v118_v1, 0.0 }
  0x4c   :  { %v120_v3 = vmin.f32 %v119_v2, 6.0 }
  0x4e   :  { %v121_v4 = vmul.f32 %v120_v3, %v117_v0 }
  0x50   :  { %v122_v5 = vmul.f32 0.16666667, %v121_v4 }
  0x52   :  { %124 = vst.msk [vmem:[#allocation7] sm:$0x1] %vm123_vm0, %v122_v5 }
  0x53   :  { %204 = shalt.err (!%p201_p1)
}
  0x54   :  { %s205_s25 = scalar_lea.hbm %s279_s2, 16 }
  0x55   :  { %p206_p2 = scmp.ne.s32.totalorder %s279_s2, %s205_s25  ;;  %p209_p3 = scmp.lt.u32.totalorder %s205_s25, %s279_s2 }
  0x57   :  { %p211_p4 = pnand %p209_p3, %p206_p2 }
  0x59   :  { %214 = shalt.err (!%p211_p4)
}
  0x5a   :  { %134 = dma.vmem_to_hbm [thread:$0]  %s132_s20, 16, %s279_s2, [#allocation4]  }
  0x5b   :  { %219 = dma.done.wait [#allocation4], 16  }
  0x5c   :  { %220 = vsyncadd [#allocation4], 4294967280 }
  0x5d   :  { %138 = vsyncpa [#allocation3], 1 }
  0x5e   :  { %139 = vsyncpa [#allocation4], 1 }
  0x5f   :  { %140 = vsyncpa [#allocation5], 1 }

</bundles_post_ra>
